<compile_context>
chip_gen: v5e
topology: v5e:2x2
jax: 0.10.0
libtpu: 0.0.40
codegen_flags: <defaults>
</compile_context>

<pallas_src>
import functools

import jax
import jax.numpy as jnp
from jax.experimental import pallas as pl
from jax.experimental.pallas import tpu as pltpu

# Module hyper-parameter defaults (AdaptiveHybridLoss / FocalLoss)
ALPHA = 0.5
GAMMA = 2.0
BETA = 0.5
MARGIN = 0.0
# reduction = 'mean'

_LANE = 128
_MAX_TB = 8192          # max batch lanes per grid step
_CORE_SPLIT = 2         # leading "parallel" grid axis (dual-TC split on v7x)
_PAD_SCORE = 1.0e4      # |pad| big enough that padded focal / BPR terms are exactly 0


# ----------------------------------------------------------------------------- utils
def _round_up(a, b):
    return -(-a // b) * b


def _cdiv(a, b):
    return -(-a // b)


def _vmem_capacity_bytes():
    try:
        info = pltpu.get_tpu_info()
        cap = getattr(info, "vmem_capacity_bytes", None)
        if cap:
            return int(cap)
    except Exception:
        pass
    return 128 << 20  # v5e / v6e default


# ----------------------------------------------------------------------------- math helpers
def _exp_inv_sp(x):
    """Shared pieces: e = exp(-|x|), inv ~= 1/(1+e) (approx rcp), sp = softplus(x)."""
    e = jnp.exp(-jnp.abs(x))
    inv = pl.reciprocal(1.0 + e, approx=True)      # EUP rcp, no Newton refinement
    sp = jnp.maximum(x, 0.0) + jnp.log1p(e)
    return e, inv, sp


def _pow_gamma(x, gamma):
    if gamma == 2.0:                                # default: VPU square, no EUP pow
        return x * x
    if gamma == 1.0:
        return x
    if gamma == 0.0:
        return jnp.ones_like(x)
    return jnp.power(x, gamma)


def _focal_pos_default(x, gamma):
    # target == 1, alpha hoisted to finalize:  (1 - sigmoid(x))**gamma * softplus(-x)
    e, inv, sp = _exp_inv_sp(x)
    one_m_sig = jnp.where(x >= 0, e, 1.0) * inv     # == sigmoid(-x)
    return _pow_gamma(one_m_sig, gamma) * (sp - x)  # softplus(-x) = sp - x


def _focal_neg_default(x, gamma):
    # target == 0, (1 - alpha) hoisted to finalize:  sigmoid(x)**gamma * softplus(x)
    e, inv, sp = _exp_inv_sp(x)
    sig = jnp.where(x >= 0, 1.0, e) * inv
    return _pow_gamma(sig, gamma) * sp


def _focal_with_targets(x, t, alpha, gamma):
    e, inv, sp = _exp_inv_sp(x)
    sig = jnp.where(x >= 0, 1.0, e) * inv
    bce = sp - t * x                                # stable BCE-with-logits
    p_t = sig * t + (1.0 - sig) * (1.0 - t)
    alpha_t = alpha * t + (1.0 - alpha) * (1.0 - t)
    return alpha_t * _pow_gamma(1.0 - p_t, gamma) * bce


def _bpr_elem(pos, neg, margin):
    # softplus(-(pos - neg - margin)) == softplus(neg - pos + margin), stable form.
    d = (neg - pos) if margin == 0.0 else (neg - pos) + margin
    return jnp.maximum(d, 0.0) + jnp.log1p(jnp.exp(-jnp.abs(d)))


def _rowsum8(x, n_rows):
    """(n_rows, TB) -> (8, TB) partial with whole-vreg VPU adds (n_rows % 8 == 0)."""
    if n_rows == 8:
        return x
    acc = x[0:8]
    for r in range(8, n_rows, 8):
        acc = acc + x[r:r + 8]
    return acc


def _sum_all(x):
    """(R, TB) -> (1, 1); only used once per core, in finalize."""
    return jnp.sum(jnp.sum(x, axis=0, keepdims=True), axis=1, keepdims=True)


# ----------------------------------------------------------------------------- accumulate
def _accumulate(i, bpr_el, fpos_el, fneg_el,
                bpr_acc, pos_acc, neg_acc,
                loss_ref, bpr_ref, bce_ref,
                *, beta, n_pad, bpr_scale, pos_scale, neg_scale):
    @pl.when(i == 0)
    def _init():
        bpr_acc[...] = jnp.zeros_like(bpr_acc)
        pos_acc[...] = jnp.zeros_like(pos_acc)
        neg_acc[...] = jnp.zeros_like(neg_acc)

    # Whole-vreg VPU adds only; the expensive cross-lane reduce is deferred to finalize.
    bpr_acc[...] += _rowsum8(bpr_el, n_pad)
    neg_acc[...] += _rowsum8(fneg_el, n_pad)
    pos_acc[...] += fpos_el

    @pl.when(i == pl.num_programs(1) - 1)
    def _finalize():
        bpr_mean = _sum_all(bpr_acc[...]) * bpr_scale
        bce_mean = (_sum_all(pos_acc[...]) * pos_scale
                    + _sum_all(neg_acc[...]) * neg_scale)
        loss = beta * bpr_mean + (1.0 - beta) * bce_mean
        loss_ref[...] = jnp.broadcast_to(loss, loss_ref.shape)
        bpr_ref[...] = jnp.broadcast_to(bpr_mean, bpr_ref.shape)
        bce_ref[...] = jnp.broadcast_to(bce_mean, bce_ref.shape)


# ----------------------------------------------------------------------------- kernels
def _hybrid_default_kernel(pos_ref, neg_ref, loss_ref, bpr_ref, bce_ref,
                           bpr_acc, pos_acc, neg_acc,
                           *, gamma, beta, margin, n_pad,
                           bpr_scale, pos_scale, neg_scale):
    """Default-target specialization: only the score tensors are streamed."""
    i = pl.program_id(1)
    pos = pos_ref[...].astype(jnp.float32)         # (1, TB)
    neg = neg_ref[...].astype(jnp.float32)         # (n_pad, TB)

    bpr_el = _bpr_elem(pos, neg, margin)           # (n_pad, TB)
    fpos_el = _focal_pos_default(pos, gamma)       # (1, TB)
    fneg_el = _focal_neg_default(neg, gamma)       # (n_pad, TB)

    _accumulate(i, bpr_el, fpos_el, fneg_el,
                bpr_acc, pos_acc, neg_acc, loss_ref, bpr_ref, bce_ref,
                beta=beta, n_pad=n_pad,
                bpr_scale=bpr_scale, pos_scale=pos_scale, neg_scale=neg_scale)


def _hybrid_targets_kernel(pos_ref, pos_t_ref, neg_ref, neg_t_ref,
                           loss_ref, bpr_ref, bce_ref,
                           bpr_acc, pos_acc, neg_acc,
                           *, alpha, gamma, beta, margin, n_pad,
                           bpr_scale, pos_scale, neg_scale):
    """General path with explicit targets (alpha_t is data-dependent, no hoist)."""
    i = pl.program_id(1)
    pos = pos_ref[...].astype(jnp.float32)
    pos_t = pos_t_ref[...].astype(jnp.float32)
    neg = neg_ref[...].astype(jnp.float32)
    neg_t = neg_t_ref[...].astype(jnp.float32)

    bpr_el = _bpr_elem(pos, neg, margin)
    fpos_el = _focal_with_targets(pos, pos_t, alpha, gamma)
    fneg_el = _focal_with_targets(neg, neg_t, alpha, gamma)

    _accumulate(i, bpr_el, fpos_el, fneg_el,
                bpr_acc, pos_acc, neg_acc, loss_ref, bpr_ref, bce_ref,
                beta=beta, n_pad=n_pad,
                bpr_scale=bpr_scale, pos_scale=pos_scale, neg_scale=neg_scale)


# ----------------------------------------------------------------------------- wrapper
def adaptive_hybrid_loss(pos_scores, neg_scores,
                         pos_targets=None, neg_targets=None,
                         alpha=ALPHA, gamma=GAMMA, beta=BETA, margin=MARGIN,
                         stream_bf16=False, max_tile_lanes=_MAX_TB):
    """JAX/Pallas equivalent of AdaptiveHybridLoss.forward (reduction='mean').

    stream_bf16=True downcasts the streamed inputs to bf16 (halves HBM traffic,
    mainly for v5e); accumulation inside the kernel is always f32.
    """
    B = pos_scores.shape[0]
    if neg_scores.ndim == 1:
        # single-negative path: treating it as (B, 1) is exact under reduction='mean'
        neg_scores = neg_scores.reshape(B, 1)
        if neg_targets is not None:
            neg_targets = neg_targets.reshape(B, 1)
    assert neg_scores.ndim == 2 and neg_scores.shape[0] == B
    N = neg_scores.shape[1]
    n_pad = _round_up(max(N, 1), 8)

    has_targets = (pos_targets is not None) or (neg_targets is not None)
    if has_targets:
        if pos_targets is None:
            pos_targets = jnp.ones_like(pos_scores)
        if neg_targets is None:
            neg_targets = jnp.zeros_like(neg_scores)

    def _prep(x):
        if stream_bf16:
            return x.astype(jnp.bfloat16)
        if x.dtype in (jnp.float32, jnp.bfloat16):
            return x                                # stream as-is, upcast in-kernel
        return x.astype(jnp.float32)

    pos_p = _prep(pos_scores)
    neg_p = _prep(neg_scores)
    per_lane_bytes = n_pad * neg_p.dtype.itemsize + pos_p.dtype.itemsize
    if has_targets:
        pos_t_p = _prep(pos_targets)
        neg_t_p = _prep(neg_targets)
        per_lane_bytes += n_pad * neg_t_p.dtype.itemsize + pos_t_p.dtype.itemsize

    # Generation-aware VMEM budget for the streamed, double-buffered tiles.
    cap = _vmem_capacity_bytes()                    # 128 MiB v5e/v6e, 64 MiB v7x
    budget = min(32 << 20, max(8 << 20, cap // 4))

    tb_cap = max(_LANE, min(_MAX_TB, int(max_tile_lanes)))
    tb = (budget // (2 * per_lane_bytes)) // _LANE * _LANE
    tb = int(min(max(tb, _LANE), tb_cap))

    nc = _CORE_SPLIT if B >= _CORE_SPLIT * _LANE else 1
    tb = min(tb, _round_up(_cdiv(B, nc), _LANE))
    n_inner = _cdiv(B, nc * tb)
    tb = min(tb, _round_up(_cdiv(B, nc * n_inner), _LANE))   # trim tail padding
    b_pad = nc * n_inner * tb

    # Padded elements are driven to exactly-zero losses by the pad scores, so the
    # kernel needs no per-element validity mask.
    def lane_1d(x, pad_val):                        # (B,) -> (1, b_pad)
        x = x.reshape(1, B)
        return jnp.pad(x, ((0, 0), (0, b_pad - B)), constant_values=pad_val)

    def lane_2d(x, pad_val):                        # (B, N) -> (n_pad, b_pad)
        x = x.reshape(B, N).T
        return jnp.pad(x, ((0, n_pad - N), (0, b_pad - B)), constant_values=pad_val)

    pos_in = lane_1d(pos_p, _PAD_SCORE)
    neg_in = lane_2d(neg_p, -_PAD_SCORE)

    inv_b = 1.0 / float(B)
    inv_bn = 1.0 / float(B * N)
    bpr_scale = inv_bn
    if has_targets:
        pos_scale, neg_scale = inv_b, inv_bn
    else:                                           # alpha / (1-alpha) hoisted here
        pos_scale = float(alpha) * inv_b
        neg_scale = (1.0 - float(alpha)) * inv_bn

    pos_spec = pl.BlockSpec((1, tb), lambda c, i: (0, c * n_inner + i))
    neg_spec = pl.BlockSpec((n_pad, tb), lambda c, i: (0, c * n_inner + i))
    out_shape = tuple(jax.ShapeDtypeStruct((1, nc * _LANE), jnp.float32) for _ in range(3))
    out_specs = tuple(pl.BlockSpec((1, _LANE), lambda c, i: (0, c)) for _ in range(3))
    scratch = [pltpu.VMEM((8, tb), jnp.float32),    # bpr partial sums
               pltpu.VMEM((1, tb), jnp.float32),    # pos-focal partial sums
               pltpu.VMEM((8, tb), jnp.float32)]    # neg-focal partial sums

    streamed_bytes = 2 * tb * per_lane_bytes        # 2 pipeline buffers
    scratch_bytes = 17 * tb * 4
    vmem_limit = max(32 << 20, streamed_bytes + scratch_bytes + (16 << 20))
    vmem_limit = min(vmem_limit, max(32 << 20, cap - (8 << 20)))
    cparams = pltpu.CompilerParams(
        dimension_semantics=("parallel", "arbitrary"),
        vmem_limit_bytes=int(vmem_limit),
    )

    common = dict(gamma=float(gamma), beta=float(beta), margin=float(margin),
                  n_pad=n_pad, bpr_scale=bpr_scale,
                  pos_scale=pos_scale, neg_scale=neg_scale)

    if not has_targets:
        kernel = functools.partial(_hybrid_default_kernel, **common)
        loss, bpr, bce = pl.pallas_call(
            kernel,
            out_shape=out_shape,
            grid=(nc, n_inner),
            in_specs=[pos_spec, neg_spec],
            out_specs=out_specs,
            scratch_shapes=scratch,
            compiler_params=cparams,
        )(pos_in, neg_in)
    else:
        pos_t_in = lane_1d(pos_t_p, 1.0)            # pad targets so padded loss == 0
        neg_t_in = lane_2d(neg_t_p, 0.0)
        kernel = functools.partial(_hybrid_targets_kernel, alpha=float(alpha), **common)
        loss, bpr, bce = pl.pallas_call(
            kernel,
            out_shape=out_shape,
            grid=(nc, n_inner),
            in_specs=[pos_spec, pos_spec, neg_spec, neg_spec],
            out_specs=out_specs,
            scratch_shapes=scratch,
            compiler_params=cparams,
        )(pos_in, pos_t_in, neg_in, neg_t_in)

    def _combine(o):                                # sum the per-core partial means
        return jnp.sum(o.reshape(nc, _LANE)[:, 0])

    return {
        "loss": _combine(loss),
        "bpr_loss": _combine(bpr),
        "bce_loss": _combine(bce),
    }


# ----------------------------------------------------------------------------- reference
def _reference(pos_scores, neg_scores, pos_targets=None, neg_targets=None,
               alpha=ALPHA, gamma=GAMMA, beta=BETA, margin=MARGIN):
    """Pure-JAX mirror of the PyTorch module (reduction='mean')."""
    pos = pos_scores.astype(jnp.float32)
    neg = neg_scores.astype(jnp.float32)
    if neg.ndim == 1:
        neg = neg.reshape(-1, 1)
        if neg_targets is not None:
            neg_targets = neg_targets.reshape(-1, 1)
    if pos_targets is None:
        pos_targets = jnp.ones_like(pos)
    if neg_targets is None:
        neg_targets = jnp.zeros_like(neg)
    pos_t = pos_targets.astype(jnp.float32)
    neg_t = neg_targets.astype(jnp.float32)

    def focal(x, t):
        p = jax.nn.sigmoid(x)
        bce = jnp.maximum(x, 0.0) - x * t + jnp.log1p(jnp.exp(-jnp.abs(x)))
        p_t = p * t + (1.0 - p) * (1.0 - t)
        a_t = alpha * t + (1.0 - alpha) * (1.0 - t)
        return a_t * jnp.power(1.0 - p_t, gamma) * bce

    diff = pos[:, None] - neg - margin
    bpr = jax.nn.softplus(-diff).mean(axis=1)
    bce = focal(pos, pos_t) + focal(neg, neg_t).mean(axis=1)
    loss = (beta * bpr + (1.0 - beta) * bce).mean()
    return {"loss": loss, "bpr_loss": bpr.mean(), "bce_loss": bce.mean()}


def _check_close(got, want, name, rtol=2e-2, atol=1e-5):
    for k in ("loss", "bpr_loss", "bce_loss"):
        g, w = jnp.asarray(got[k]), jnp.asarray(want[k])
        if not bool(jnp.allclose(g, w, rtol=rtol, atol=atol)):
            raise AssertionError(f"{name}: {k} mismatch: got {float(g)} want {float(w)}")


# ----------------------------------------------------------------------------- demo
if __name__ == "__main__":
    key = jax.random.PRNGKey(0)
    k1, k2, k3, k4 = jax.random.split(key, 4)

    # Small default-target (specialized) path.
    B, N = 8, 16
    pos = jax.random.normal(k1, (B,), dtype=jnp.float32)
    neg = jax.random.normal(k2, (B, N), dtype=jnp.float32)
    out = adaptive_hybrid_loss(pos, neg)
    jax.block_until_ready(out["loss"])
    _check_close(out, _reference(pos, neg), "default")

    # Explicit-target (general) path.
    pos_t = (jax.random.uniform(k3, (B,)) > 0.2).astype(jnp.float32)
    neg_t = (jax.random.uniform(k4, (B, N)) > 0.9).astype(jnp.float32)
    out_t = adaptive_hybrid_loss(pos, neg, pos_targets=pos_t, neg_targets=neg_t)
    jax.block_until_ready(out_t["loss"])
    _check_close(out_t, _reference(pos, neg, pos_t, neg_t), "targets")

    # Larger batch exercising the 2-way core split, multi-step accumulation and
    # both row (N -> n_pad) and column (B -> b_pad) padding.
    B2, N2 = 600, 12
    pos2 = jax.random.normal(k1, (B2,), dtype=jnp.float32)
    neg2 = jax.random.normal(k2, (B2, N2), dtype=jnp.float32)
    out2 = adaptive_hybrid_loss(pos2, neg2, max_tile_lanes=128)
    jax.block_until_ready(out2["loss"])
    _check_close(out2, _reference(pos2, neg2), "tiled")

    # Single-negative (1-D neg_scores) path.
    neg1 = jax.random.normal(k2, (B,), dtype=jnp.float32)
    out1 = adaptive_hybrid_loss(pos, neg1)
    jax.block_until_ready(out1["loss"])
    _check_close(out1, _reference(pos, neg1), "single_neg")

    print("KERNEL_OK")
</pallas_src>

<mosaic_0001>
module attributes {stable_mosaic.version = 11 : i64} {
  func.func @_hybrid_default_kernel(%arg0: i32, %arg1: i32, %arg2: memref<1x128xf32, #tpu.memory_space<vmem>>, %arg3: memref<16x128xf32, #tpu.memory_space<vmem>>, %arg4: memref<1x128xf32, #tpu.memory_space<vmem>>, %arg5: memref<1x128xf32, #tpu.memory_space<vmem>>, %arg6: memref<1x128xf32, #tpu.memory_space<vmem>>, %arg7: memref<8x128xf32, #tpu.memory_space<vmem>>, %arg8: memref<1x128xf32, #tpu.memory_space<vmem>>, %arg9: memref<8x128xf32, #tpu.memory_space<vmem>>) attributes {dimension_semantics = [#tpu.dimension_semantics<parallel>, #tpu.dimension_semantics<arbitrary>], iteration_bounds = array<i64: 1, 1>, scalar_prefetch = 0 : i64, scratch_operands = 3 : i64, tpu.core_type = #tpu.core_type<tc>, window_params = [{transform_indices = @transform_0, window_bounds = array<i64: 1, 128>}, {transform_indices = @transform_1, window_bounds = array<i64: 16, 128>}, {transform_indices = @transform_2, window_bounds = array<i64: 1, 128>}, {transform_indices = @transform_3, window_bounds = array<i64: 1, 128>}, {transform_indices = @transform_4, window_bounds = array<i64: 1, 128>}]} {
    %c0 = arith.constant 0 : index
    %c0_0 = arith.constant 0 : index
    %0 = vector.load %arg2[%c0, %c0_0] : memref<1x128xf32, #tpu.memory_space<vmem>>, vector<1x128xf32>
    %c0_1 = arith.constant 0 : index
    %c0_2 = arith.constant 0 : index
    %1 = vector.load %arg3[%c0_1, %c0_2] : memref<16x128xf32, #tpu.memory_space<vmem>>, vector<16x128xf32>
    %2 = vector.broadcast %0 : vector<1x128xf32> to vector<16x128xf32>
    %3 = arith.subf %1, %2 : vector<16x128xf32>
    %cst = arith.constant 0.000000e+00 : f32
    %4 = vector.broadcast %cst : f32 to vector<16x128xf32>
    %5 = arith.maximumf %3, %4 : vector<16x128xf32>
    %6 = math.absf %3 : vector<16x128xf32>
    %cst_3 = arith.constant 0.000000e+00 : f32
    %7 = vector.broadcast %cst_3 : f32 to vector<16x128xf32>
    %8 = arith.subf %7, %6 : vector<16x128xf32>
    %9 = math.exp %8 : vector<16x128xf32>
    %10 = math.log1p %9 : vector<16x128xf32>
    %11 = arith.addf %5, %10 : vector<16x128xf32>
    %12 = math.absf %0 : vector<1x128xf32>
    %cst_4 = arith.constant 0.000000e+00 : f32
    %13 = vector.broadcast %cst_4 : f32 to vector<1x128xf32>
    %14 = arith.subf %13, %12 : vector<1x128xf32>
    %15 = math.exp %14 : vector<1x128xf32>
    %cst_5 = arith.constant 1.000000e+00 : f32
    %16 = vector.broadcast %cst_5 : f32 to vector<1x128xf32>
    %17 = arith.addf %16, %15 : vector<1x128xf32>
    %18 = tpu.reciprocal %17 {approx = true} : vector<1x128xf32> -> vector<1x128xf32>
    %cst_6 = arith.constant 0.000000e+00 : f32
    %19 = vector.broadcast %cst_6 : f32 to vector<1x128xf32>
    %20 = arith.maximumf %0, %19 : vector<1x128xf32>
    %21 = math.log1p %15 : vector<1x128xf32>
    %22 = arith.addf %20, %21 : vector<1x128xf32>
    %cst_7 = arith.constant 0.000000e+00 : f32
    %23 = vector.broadcast %cst_7 : f32 to vector<1x128xf32>
    %24 = arith.cmpf oge, %0, %23 : vector<1x128xf32>
    %cst_8 = arith.constant 1.000000e+00 : f32
    %25 = vector.broadcast %cst_8 : f32 to vector<1x128xf32>
    %26 = arith.select %24, %15, %25 : vector<1x128xi1>, vector<1x128xf32>
    %27 = arith.mulf %26, %18 : vector<1x128xf32>
    %28 = arith.mulf %27, %27 : vector<1x128xf32>
    %29 = arith.subf %22, %0 : vector<1x128xf32>
    %30 = arith.mulf %28, %29 : vector<1x128xf32>
    %31 = math.absf %1 : vector<16x128xf32>
    %cst_9 = arith.constant 0.000000e+00 : f32
    %32 = vector.broadcast %cst_9 : f32 to vector<16x128xf32>
    %33 = arith.subf %32, %31 : vector<16x128xf32>
    %34 = math.exp %33 : vector<16x128xf32>
    %cst_10 = arith.constant 1.000000e+00 : f32
    %35 = vector.broadcast %cst_10 : f32 to vector<16x128xf32>
    %36 = arith.addf %35, %34 : vector<16x128xf32>
    %37 = tpu.reciprocal %36 {approx = true} : vector<16x128xf32> -> vector<16x128xf32>
    %cst_11 = arith.constant 0.000000e+00 : f32
    %38 = vector.broadcast %cst_11 : f32 to vector<16x128xf32>
    %39 = arith.maximumf %1, %38 : vector<16x128xf32>
    %40 = math.log1p %34 : vector<16x128xf32>
    %41 = arith.addf %39, %40 : vector<16x128xf32>
    %cst_12 = arith.constant 0.000000e+00 : f32
    %42 = vector.broadcast %cst_12 : f32 to vector<16x128xf32>
    %43 = arith.cmpf oge, %1, %42 : vector<16x128xf32>
    %cst_13 = arith.constant 1.000000e+00 : f32
    %44 = vector.broadcast %cst_13 : f32 to vector<16x128xf32>
    %45 = arith.select %43, %44, %34 : vector<16x128xi1>, vector<16x128xf32>
    %46 = arith.mulf %45, %37 : vector<16x128xf32>
    %47 = arith.mulf %46, %46 : vector<16x128xf32>
    %48 = arith.mulf %47, %41 : vector<16x128xf32>
    %c0_i32 = arith.constant 0 : i32
    %49 = arith.cmpi eq, %arg1, %c0_i32 : i32
    %50 = arith.extui %49 : i1 to i32
    %c0_i32_14 = arith.constant 0 : i32
    %51 = arith.cmpi ne, %50, %c0_i32_14 : i32
    scf.if %51 {
      %cst_29 = arith.constant 0.000000e+00 : f32
      %70 = vector.broadcast %cst_29 : f32 to vector<8x128xf32>
      %c0_30 = arith.constant 0 : index
      %c0_31 = arith.constant 0 : index
      %71 = vector.load %arg7[%c0_30, %c0_31] : memref<8x128xf32, #tpu.memory_space<vmem>>, vector<8x128xf32>
      tpu.vector_store %arg7[%c0_30, %c0_31], %70 {strides = array<i32>} : memref<8x128xf32, #tpu.memory_space<vmem>>, vector<8x128xf32>,
      %cst_32 = arith.constant 0.000000e+00 : f32
      %72 = vector.broadcast %cst_32 : f32 to vector<1x128xf32>
      %c0_33 = arith.constant 0 : index
      %c0_34 = arith.constant 0 : index
      %73 = vector.load %arg8[%c0_33, %c0_34] : memref<1x128xf32, #tpu.memory_space<vmem>>, vector<1x128xf32>
      tpu.vector_store %arg8[%c0_33, %c0_34], %72 {strides = array<i32>} : memref<1x128xf32, #tpu.memory_space<vmem>>, vector<1x128xf32>,
      %cst_35 = arith.constant 0.000000e+00 : f32
      %74 = vector.broadcast %cst_35 : f32 to vector<8x128xf32>
      %c0_36 = arith.constant 0 : index
      %c0_37 = arith.constant 0 : index
      %75 = vector.load %arg9[%c0_36, %c0_37] : memref<8x128xf32, #tpu.memory_space<vmem>>, vector<8x128xf32>
      tpu.vector_store %arg9[%c0_36, %c0_37], %74 {strides = array<i32>} : memref<8x128xf32, #tpu.memory_space<vmem>>, vector<8x128xf32>,
    } else {
    }
    %c0_15 = arith.constant 0 : index
    %c0_16 = arith.constant 0 : index
    %52 = vector.load %arg7[%c0_15, %c0_16] : memref<8x128xf32, #tpu.memory_space<vmem>>, vector<8x128xf32>
    %53 = vector.extract_strided_slice %11 {offsets = [0, 0], sizes = [8, 128], strides = [1, 1]} : vector<16x128xf32> to vector<8x128xf32>
    %54 = vector.extract_strided_slice %11 {offsets = [8, 0], sizes = [8, 128], strides = [1, 1]} : vector<16x128xf32> to vector<8x128xf32>
    %55 = arith.addf %53, %54 : vector<8x128xf32>
    %56 = arith.addf %52, %55 : vector<8x128xf32>
    %c0_17 = arith.constant 0 : index
    %c0_18 = arith.constant 0 : index
    %57 = vector.load %arg7[%c0_17, %c0_18] : memref<8x128xf32, #tpu.memory_space<vmem>>, vector<8x128xf32>
    tpu.vector_store %arg7[%c0_17, %c0_18], %56 {strides = array<i32>} : memref<8x128xf32, #tpu.memory_space<vmem>>, vector<8x128xf32>,
    %c0_19 = arith.constant 0 : index
    %c0_20 = arith.constant 0 : index
    %58 = vector.load %arg9[%c0_19, %c0_20] : memref<8x128xf32, #tpu.memory_space<vmem>>, vector<8x128xf32>
    %59 = vector.extract_strided_slice %48 {offsets = [0, 0], sizes = [8, 128], strides = [1, 1]} : vector<16x128xf32> to vector<8x128xf32>
    %60 = vector.extract_strided_slice %48 {offsets = [8, 0], sizes = [8, 128], strides = [1, 1]} : vector<16x128xf32> to vector<8x128xf32>
    %61 = arith.addf %59, %60 : vector<8x128xf32>
    %62 = arith.addf %58, %61 : vector<8x128xf32>
    %c0_21 = arith.constant 0 : index
    %c0_22 = arith.constant 0 : index
    %63 = vector.load %arg9[%c0_21, %c0_22] : memref<8x128xf32, #tpu.memory_space<vmem>>, vector<8x128xf32>
    tpu.vector_store %arg9[%c0_21, %c0_22], %62 {strides = array<i32>} : memref<8x128xf32, #tpu.memory_space<vmem>>, vector<8x128xf32>,
    %c0_23 = arith.constant 0 : index
    %c0_24 = arith.constant 0 : index
    %64 = vector.load %arg8[%c0_23, %c0_24] : memref<1x128xf32, #tpu.memory_space<vmem>>, vector<1x128xf32>
    %65 = arith.addf %64, %30 : vector<1x128xf32>
    %c0_25 = arith.constant 0 : index
    %c0_26 = arith.constant 0 : index
    %66 = vector.load %arg8[%c0_25, %c0_26] : memref<1x128xf32, #tpu.memory_space<vmem>>, vector<1x128xf32>
    tpu.vector_store %arg8[%c0_25, %c0_26], %65 {strides = array<i32>} : memref<1x128xf32, #tpu.memory_space<vmem>>, vector<1x128xf32>,
    %c0_i32_27 = arith.constant 0 : i32
    %67 = arith.cmpi eq, %arg1, %c0_i32_27 : i32
    %68 = arith.extui %67 : i1 to i32
    %c0_i32_28 = arith.constant 0 : i32
    %69 = arith.cmpi ne, %68, %c0_i32_28 : i32
    scf.if %69 {
      %c0_29 = arith.constant 0 : index
      %c0_30 = arith.constant 0 : index
      %70 = vector.load %arg7[%c0_29, %c0_30] : memref<8x128xf32, #tpu.memory_space<vmem>>, vector<8x128xf32>
      %cst_31 = arith.constant dense<0.000000e+00> : vector<128xf32>
      %71 = vector.multi_reduction <add>, %70, %cst_31 [0] : vector<8x128xf32> to vector<128xf32>
      %72 = vector.shape_cast %71 : vector<128xf32> to vector<1x128xf32>
      %cst_32 = arith.constant dense<0.000000e+00> : vector<1xf32>
      %73 = vector.multi_reduction <add>, %72, %cst_32 [1] : vector<1x128xf32> to vector<1xf32>
      %74 = vector.shape_cast %73 : vector<1xf32> to vector<1x1xf32>
      %cst_33 = arith.constant 7.812500e-03 : f32
      %75 = vector.broadcast %cst_33 : f32 to vector<1x1xf32>
      %76 = arith.mulf %74, %75 : vector<1x1xf32>
      %c0_34 = arith.constant 0 : index
      %c0_35 = arith.constant 0 : index
      %77 = vector.load %arg8[%c0_34, %c0_35] : memref<1x128xf32, #tpu.memory_space<vmem>>, vector<1x128xf32>
      %cst_36 = arith.constant dense<0.000000e+00> : vector<128xf32>
      %78 = vector.multi_reduction <add>, %77, %cst_36 [0] : vector<1x128xf32> to vector<128xf32>
      %79 = vector.shape_cast %78 : vector<128xf32> to vector<1x128xf32>
      %cst_37 = arith.constant dense<0.000000e+00> : vector<1xf32>
      %80 = vector.multi_reduction <add>, %79, %cst_37 [1] : vector<1x128xf32> to vector<1xf32>
      %81 = vector.shape_cast %80 : vector<1xf32> to vector<1x1xf32>
      %cst_38 = arith.constant 6.250000e-02 : f32
      %82 = vector.broadcast %cst_38 : f32 to vector<1x1xf32>
      %83 = arith.mulf %81, %82 : vector<1x1xf32>
      %c0_39 = arith.constant 0 : index
      %c0_40 = arith.constant 0 : index
      %84 = vector.load %arg9[%c0_39, %c0_40] : memref<8x128xf32, #tpu.memory_space<vmem>>, vector<8x128xf32>
      %cst_41 = arith.constant dense<0.000000e+00> : vector<128xf32>
      %85 = vector.multi_reduction <add>, %84, %cst_41 [0] : vector<8x128xf32> to vector<128xf32>
      %86 = vector.shape_cast %85 : vector<128xf32> to vector<1x128xf32>
      %cst_42 = arith.constant dense<0.000000e+00> : vector<1xf32>
      %87 = vector.multi_reduction <add>, %86, %cst_42 [1] : vector<1x128xf32> to vector<1xf32>
      %88 = vector.shape_cast %87 : vector<1xf32> to vector<1x1xf32>
      %cst_43 = arith.constant 3.906250e-03 : f32
      %89 = vector.broadcast %cst_43 : f32 to vector<1x1xf32>
      %90 = arith.mulf %88, %89 : vector<1x1xf32>
      %91 = arith.addf %83, %90 : vector<1x1xf32>
      %cst_44 = arith.constant 5.000000e-01 : f32
      %92 = vector.broadcast %cst_44 : f32 to vector<1x1xf32>
      %93 = arith.mulf %92, %76 : vector<1x1xf32>
      %cst_45 = arith.constant 5.000000e-01 : f32
      %94 = vector.broadcast %cst_45 : f32 to vector<1x1xf32>
      %95 = arith.mulf %94, %91 : vector<1x1xf32>
      %96 = arith.addf %93, %95 : vector<1x1xf32>
      %97 = vector.shape_cast %96 : vector<1x1xf32> to vector<1x1xf32>
      %98 = vector.broadcast %97 : vector<1x1xf32> to vector<1x128xf32>
      %c0_46 = arith.constant 0 : index
      %c0_47 = arith.constant 0 : index
      %99 = vector.load %arg4[%c0_46, %c0_47] : memref<1x128xf32, #tpu.memory_space<vmem>>, vector<1x128xf32>
      tpu.vector_store %arg4[%c0_46, %c0_47], %98 {strides = array<i32>} : memref<1x128xf32, #tpu.memory_space<vmem>>, vector<1x128xf32>,
      %100 = vector.shape_cast %76 : vector<1x1xf32> to vector<1x1xf32>
      %101 = vector.broadcast %100 : vector<1x1xf32> to vector<1x128xf32>
      %c0_48 = arith.constant 0 : index
      %c0_49 = arith.constant 0 : index
      %102 = vector.load %arg5[%c0_48, %c0_49] : memref<1x128xf32, #tpu.memory_space<vmem>>, vector<1x128xf32>
      tpu.vector_store %arg5[%c0_48, %c0_49], %101 {strides = array<i32>} : memref<1x128xf32, #tpu.memory_space<vmem>>, vector<1x128xf32>,
      %103 = vector.shape_cast %91 : vector<1x1xf32> to vector<1x1xf32>
      %104 = vector.broadcast %103 : vector<1x1xf32> to vector<1x128xf32>
      %c0_50 = arith.constant 0 : index
      %c0_51 = arith.constant 0 : index
      %105 = vector.load %arg6[%c0_50, %c0_51] : memref<1x128xf32, #tpu.memory_space<vmem>>, vector<1x128xf32>
      tpu.vector_store %arg6[%c0_50, %c0_51], %104 {strides = array<i32>} : memref<1x128xf32, #tpu.memory_space<vmem>>, vector<1x128xf32>,
    } else {
    }
    return
  }
  func.func @transform_0(%arg0: i32, %arg1: i32) -> (i32, i32) {
    %c1_i32 = arith.constant 1 : i32
    %0 = arith.muli %arg0, %c1_i32 : i32
    %1 = arith.addi %0, %arg1 : i32
    %c0_i32 = arith.constant 0 : i32
    %c0_i32_0 = arith.constant 0 : i32
    return %c0_i32, %1 : i32, i32
  }
  func.func @transform_1(%arg0: i32, %arg1: i32) -> (i32, i32) {
    %c1_i32 = arith.constant 1 : i32
    %0 = arith.muli %arg0, %c1_i32 : i32
    %1 = arith.addi %0, %arg1 : i32
    %c0_i32 = arith.constant 0 : i32
    %c0_i32_0 = arith.constant 0 : i32
    return %c0_i32, %1 : i32, i32
  }
  func.func @transform_2(%arg0: i32, %arg1: i32) -> (i32, i32) {
    %c0_i32 = arith.constant 0 : i32
    %c0_i32_0 = arith.constant 0 : i32
    return %c0_i32, %arg0 : i32, i32
  }
  func.func @transform_3(%arg0: i32, %arg1: i32) -> (i32, i32) {
    %c0_i32 = arith.constant 0 : i32
    %c0_i32_0 = arith.constant 0 : i32
    return %c0_i32, %arg0 : i32, i32
  }
  func.func @transform_4(%arg0: i32, %arg1: i32) -> (i32, i32) {
    %c0_i32 = arith.constant 0 : i32
    %c0_i32_0 = arith.constant 0 : i32
    return %c0_i32, %arg0 : i32, i32
  }
}

</mosaic_0001>

<bundles_post_ra>
// kernel: tpu_custom_call.1
= control target key start
LH: loop header
LB: loop body
LE: loop exit
PB: predicated region body
PF: predicated region fallthrough
CT: control target
= control target key end

     0   :  { %10 = vsyncpa [#allocation6], 0  ;;  %s525_s0 = inlined_call_operand.hbm [shape: f32[1,128], index: 0, kind: input, shape index: {}]   ;;  %s526_s1 = inlined_call_operand.hbm [shape: f32[16,128], index: 1, kind: input, shape index: {}]   ;;  %s527_s2 = inlined_call_operand.hbm [shape: f32[1,128], index: 2, kind: output, shape index: {0}]   ;;  %s528_s3 = inlined_call_operand.hbm [shape: f32[1,128], index: 3, kind: output, shape index: {1}]   ;;  %s529_s4 = inlined_call_operand.hbm [shape: f32[1,128], index: 4, kind: output, shape index: {2}]  }
   0x1   :  { %11 = vsyncpa [#allocation9], 0 }
   0x2   :  { %12 = vsyncpa [#allocation7], 0 }
   0x3   :  { %13 = vsyncpa [#allocation12], 0  ;;  %s21_s17 = sshll.u32 %s525_s0, 4  ;;  %s425_s18 = smov [#allocation5]   ;;  %s22_s17 = int_to_ptr.hbm [resolvable:$true] %s21_s17 }
   0x4   :  { %s23_s19 = sshll.u32 %s425_s18, 4  ;;  %s34_s22 = sshll.u32 %s526_s1, 4  ;;  %s24_s19 = int_to_ptr.vmem [resolvable:$true] %s23_s19  ;;  %s35_s22 = int_to_ptr.hbm [resolvable:$true] %s34_s22 }
   0x5   :  { %26 = dma.hbm_to_vmem [thread:$0]  %s22_s17, 16, %s24_s19, [#allocation6]  }
   0x6   :  { %s426_s23 = smov [#allocation8]   ;;  %s427_s25 = smov 128  }
   0x7   :  { %s36_s24 = sshll.u32 %s426_s23, 4  ;;  %s428_s26 = smov 8   ;;  %s37_s24 = int_to_ptr.vmem [resolvable:$true] %s36_s24 }
   0x8   :  { %42 = dma.hbm_to_vmem [thread:$0]  %s35_s22, 256, %s37_s24, [#allocation9], %s427_s25, %s427_s25, %s428_s26  }
   0x9   :  { %417 = dma.done.wait [#allocation6], 16  }
   0xa   :  { %418 = vsyncadd [#allocation6], 4294967280 }
   0xb   :  { %419 = dma.done.wait [#allocation9], 256  }
   0xc   :  { %420 = vsyncadd [#allocation9], 4294967040  ;;  %v429_v0 = vmov 0.0   ;;  %v464_v1 = vld [vmem:[#allocation5] sm:$0x1]  ;;  %v466_v2 = vld [vmem:[#allocation8] sm:$0xff] }
   0xd   :  { %163 = vst [vmem:[#allocation3] sm:$0x1] %v429_v0  ;;  %v468_v3 = vld [vmem:[#allocation8 + $0x8] sm:$0xff]  ;;  %v91_v4 = vand.u32 2147483647, %v464_v1  ;;  %vm108_vm0 = vcmp.ge.f32.partialorder %v464_v1, 0.0 }
   0xe   :  { %v114_v5 = vand.u32 2147483647, %v466_v2  ;;  %v115_v6 = vand.u32 2147483647, %v468_v3  ;;  %v270_v8 = vld [vmem:[#allocation5] ss:$0 sm:$0xff] }
   0xf   :  { %v92_v7 = vsub.f32 0.0, %v91_v4  ;;  %v474_v12 = vsub.f32 %v466_v2, %v270_v8  ;;  %v477_v15 = vsub.f32 %v468_v3, %v270_v8  ;;  %vm148_vm1 = vcmp.ge.f32.partialorder %v466_v2, 0.0  ;;  %s430_s0 = smov [#allocation11]   ;;  %s231_s29 = sshll.u32 %s528_s3, 4  ;;  %s232_s29 = int_to_ptr.hbm [resolvable:$true] %s231_s29 }
  0x10   :  { %v116_v9 = vsub.f32 0.0, %v114_v5  ;;  %v117_v10 = vsub.f32 0.0, %v115_v6  ;;  %v97_v33 = vmax.f32 %v464_v1, 0.0  ;;  %vm149_vm2 = vcmp.ge.f32.partialorder %v468_v3, 0.0  ;;  %s229_s1 = sshll.u32 %s430_s0, 4  ;;  %s431_s30 = smov [#allocation13]   ;;  %s230_s1 = int_to_ptr.vmem [resolvable:$true] %s229_s1 }
  0x11   :  { %v93_v11 = vmul.f32 1.442695, %v92_v7  ;;  %v63_v16 = vand.u32 2147483647, %v474_v12  ;;  %v64_v18 = vand.u32 2147483647, %v477_v15 }
  0x12   :  { %v118_v13 = vmul.f32 1.442695, %v116_v9  ;;  %v120_v14 = vmul.f32 1.442695, %v117_v10  ;;  %v126_v50 = vmax.f32 %v466_v2, 0.0  ;;  %v127_v53 = vmax.f32 %v468_v3, 0.0 }
  0x13   :  { %271 = vpow2.f32 %v93_v11  ;;  %v65_v17 = vsub.f32 0.0, %v63_v16  ;;  %v66_v24 = vsub.f32 0.0, %v64_v18  ;;  %vm191_vm8 = vcmask 1040384   ;;  %s240_s5 = sshll.u32 %s431_s30, 4  ;;  %s242_s8 = sshll.u32 %s529_s4, 4  ;;  %s241_s5 = int_to_ptr.vmem [resolvable:$true] %s240_s5  ;;  %s243_s8 = int_to_ptr.hbm [resolvable:$true] %s242_s8 }
  0x14   :  { %273 = vpow2.f32 %v118_v13  ;;  %v173_v16 = vld [vmem:[#allocation3] sm:$0x1]  ;;  %s432_s9 = smov [#allocation10]   ;;  %s220_s13 = sshll.u32 %s527_s2, 4  ;;  %s221_s13 = int_to_ptr.hbm [resolvable:$true] %s220_s13 }
  0x15   :  { %275 = vpow2.f32 %v120_v14  ;;  %v67_v19 = vmul.f32 1.442695, %v65_v17  ;;  %v69_v31 = vmul.f32 1.442695, %v66_v24  ;;  %s218_s10 = sshll.u32 %s432_s9, 4  ;;  %s219_s10 = int_to_ptr.vmem [resolvable:$true] %s218_s10 }
  0x17   :  { %277 = vpow2.f32 %v67_v19 }
  0x19   :  { %v272_v20 = vpop.eup %271 }
  0x1a   :  { %v274_v21 = vpop.eup %273  ;;  %v95_v22 = vadd.f32 1.0, %v272_v20  ;;  %v101_v23 = vmul.f32 -0.5, %v272_v20  ;;  %v104_v34 = vand.u32 2147483647, %v272_v20  ;;  %v109_v35 = vsel %vm108_vm0, %v272_v20, 1.0 }
  0x1b   :  { %v276_v25 = vpop.eup %275  ;;  %v122_v26 = vadd.f32 1.0, %v274_v21  ;;  %v131_v28 = vmul.f32 -0.5, %v274_v21  ;;  %v134_v38 = vand.u32 2147483647, %v274_v21  ;;  %v150_v39 = vsel %vm148_vm1, 1.0, %v274_v21 }
  0x1c   :  { %279 = vrcp.f32 %v95_v22  ;;  %v123_v27 = vadd.f32 1.0, %v276_v25  ;;  %v102_v29 = vadd.f32 1.0, %v101_v23  ;;  %v140_v30 = vmul.f32 -0.5, %v276_v25 }
  0x1d   :  { %281 = vlog2.f32 %v95_v22  ;;  %v483_v32 = vpop.eup %277  ;;  %v132_v37 = vadd.f32 1.0, %v131_v28  ;;  %v143_v43 = vand.u32 2147483647, %v276_v25  ;;  %vm490_vm3 = vcmp.lt.f32.partialorder %v104_v34, 0.0004427343 }
  0x1e   :  { %283 = vrcp.f32 %v122_v26  ;;  %v71_v36 = vadd.f32 1.0, %v483_v32  ;;  %v103_v41 = vmul.f32 %v272_v20, %v102_v29  ;;  %v141_v42 = vadd.f32 1.0, %v140_v30 }
  0x1f   :  { %285 = vrcp.f32 %v123_v27  ;;  %v151_v47 = vsel %vm149_vm2, 1.0, %v276_v25  ;;  %v74_v51 = vmul.f32 -0.5, %v483_v32  ;;  %v133_v54 = vmul.f32 %v274_v21, %v132_v37 }
  0x20   :  { %287 = vlog2.f32 %v122_v26  ;;  %vm497_vm4 = vcmp.lt.f32.partialorder %v134_v38, 0.0004427343  ;;  %v142_v59 = vmul.f32 %v276_v25, %v141_v42  ;;  %vm503_vm5 = vcmp.lt.f32.partialorder %v143_v43, 0.0004427343 }
  0x21   :  { %289 = vlog2.f32 %v123_v27  ;;  %v77_v3 = vand.u32 2147483647, %v483_v32  ;;  %v75_v8 = vadd.f32 1.0, %v74_v51  ;;  %v61_v28 = vmax.f32 %v474_v12, 0.0 }
  0x22   :  { %v280_v40 = vpop.eup %279  ;;  %291 = vpow2.f32 %v69_v31  ;;  %v62_v34 = vmax.f32 %v477_v15, 0.0 }
  0x23   :  { %v282_v44 = vpop.eup %281  ;;  %v110_v46 = vmul.f32 %v280_v40, %v109_v35  ;;  %293 = vlog2.f32 %v71_v36  ;;  %v76_v23 = vmul.f32 %v483_v32, %v75_v8  ;;  %vm78_vm6 = vcmp.lt.f32.partialorder %v77_v3, 0.0004427343 }
  0x24   :  { %v284_v48 = vpop.eup %283  ;;  %v100_v49 = vmul.f32 0.6931472, %v282_v44 }
  0x25   :  { %v286_v52 = vpop.eup %285  ;;  %v152_v56 = vmul.f32 %v284_v48, %v150_v39  ;;  %v111_v0 = vmul.f32 %v110_v46, %v110_v46 }
  0x26   :  { %v288_v57 = vpop.eup %287  ;;  %v106_v58 = vsel %vm490_vm3, %v103_v41, %v100_v49  ;;  %v153_v61 = vmul.f32 %v286_v52, %v151_v47 }
  0x27   :  { %v290_v62 = vpop.eup %289  ;;  %v107_v63 = vadd.f32 %v106_v58, %v97_v33  ;;  %v130_v2 = vmul.f32 0.6931472, %v288_v57  ;;  %v154_v6 = vmul.f32 %v152_v56, %v152_v56 }
  0x28   :  { %v292_v4 = vpop.eup %291  ;;  %v139_v5 = vmul.f32 0.6931472, %v290_v62  ;;  %v155_v7 = vmul.f32 %v153_v61, %v153_v61 }
  0x29   :  { %v294_v9 = vpop.eup %293  ;;  %v112_v10 = vsub.f32 %v107_v63, %v464_v1  ;;  %v136_v11 = vsel %vm497_vm4, %v133_v54, %v130_v2  ;;  %v80_v13 = vadd.f32 1.0, %v292_v4  ;;  %v83_v14 = vmul.f32 -0.5, %v292_v4 }
  0x2a   :  { %v145_v17 = vsel %vm503_vm5, %v142_v59, %v139_v5  ;;  %v146_v18 = vadd.f32 %v136_v11, %v126_v50  ;;  %v73_v22 = vmul.f32 0.6931472, %v294_v9  ;;  %v86_v26 = vand.u32 2147483647, %v292_v4 }
  0x2b   :  { %v113_v19 = vmul.f32 %v112_v10, %v111_v0  ;;  %v147_v20 = vadd.f32 %v145_v17, %v127_v53  ;;  %295 = vlog2.f32 %v80_v13  ;;  %v84_v24 = vadd.f32 1.0, %v83_v14 }
  0x2c   :  { %v156_v21 = vmul.f32 %v154_v6, %v146_v18  ;;  %v79_v29 = vsel %vm78_vm6, %v76_v23, %v73_v22  ;;  %vm87_vm7 = vcmp.lt.f32.partialorder %v86_v26, 0.0004427343 }
  0x2d   :  { %v174_v25 = vadd.f32 %v173_v16, %v113_v19  ;;  %v157_v1 = vmul.f32 %v155_v7, %v147_v20  ;;  %v85_v30 = vmul.f32 %v292_v4, %v84_v24  ;;  %v89_v37 = vadd.f32 %v79_v29, %v61_v28 }
  0x2f   :  { %175 = vst [vmem:[#allocation3] sm:$0x1] %v174_v25  ;;  %v170_v27 = vadd.f32 %v157_v1, %v156_v21 }
  0x31   :  { %v296_v31 = vpop.eup %295  ;;  %v197_v33 = vrot.slane %v170_v27, 4 }
  0x32   :  { %v82_v35 = vmul.f32 0.6931472, %v296_v31 }
  0x33   :  { %v198_v36 = vadd.f32 %v197_v33, %v170_v27 }
  0x34   :  { %v88_v32 = vsel %vm87_vm7, %v85_v30, %v82_v35 }
  0x35   :  { %v199_v38 = vrot.slane %v198_v36, 2  ;;  %v90_v39 = vadd.f32 %v88_v32, %v62_v34 }
  0x36   :  { %v189_v40 = vld [vmem:[#allocation3] sm:$0x1] }
  0x37   :  { %v192_v41 = vsel %vm191_vm8, %v189_v40, 0.0  ;;  %v200_v42 = vadd.f32 %v199_v38, %v198_v36  ;;  %v166_v43 = vadd.f32 %v90_v39, %v89_v37 }
  0x38   :  { %193 = vadd.xlane.f32.xlu0 %v192_v41 }
  0x39   :  { %v201_v12 = vrot.slane %v200_v42, 1  ;;  %v180_v44 = vrot.slane %v166_v43, 4 }
  0x3b   :  { %v181_v45 = vadd.f32 %v180_v44, %v166_v43  ;;  %v202_v46 = vadd.f32 %v201_v12, %v200_v42 }
  0x3d   :  { %v182_v47 = vrot.slane %v181_v45, 2 }
  0x3f   :  { %v183_v48 = vadd.f32 %v182_v47, %v181_v45 }
  0x40   :  { %203 = vadd.xlane.f32.xlu0 %v202_v46 }
  0x41   :  { %v184_v15 = vrot.slane %v183_v48, 1 }
  0x43   :  { %v185_v49 = vadd.f32 %v184_v15, %v183_v48 }
  0x45   :  { %186 = vadd.xlane.f32.xlu1 %v185_v49 }
  0xab   :  { %v194_v50 = vpop.xlane.xlu0 %193 }
  0xac   :  { %v195_v52 = vmul.f32 0.0625, %v194_v50 }
  0xb3   :  { %v204_v51 = vpop.xlane.xlu0 %203 }
  0xb4   :  { %v205_v53 = vmul.f32 0.00390625, %v204_v51 }
  0xb6   :  { %v206_v54 = vadd.f32 %v205_v53, %v195_v52 }
  0xb8   :  { %212 = vst [vmem:[#allocation13] sm:$0x1] %v206_v54  ;;  %v187_v55 = vpop.xlane.xlu1 %186  ;;  %v208_v56 = vmul.f32 0.5, %v206_v54 }
  0xb9   :  { %v188_v57 = vmul.f32 0.0078125, %v187_v55 }
  0xbb   :  { %v207_v58 = vmul.f32 0.5, %v188_v57  ;;  %211 = vst [vmem:[#allocation11] sm:$0x1] %v188_v57 }
  0xbc   :  { %234 = dma.vmem_to_hbm [thread:$0]  %s230_s1, 16, %s232_s29, [#allocation12]  }
  0xbd   :  { %v209_v59 = vadd.f32 %v208_v56, %v207_v58  ;;  %245 = dma.vmem_to_hbm [thread:$0]  %s241_s5, 16, %s243_s8, [#allocation12]  }
  0xbf   :  { %210 = vst [vmem:[#allocation10] sm:$0x1] %v209_v59 }
  0xc0   :  { %223 = dma.vmem_to_hbm [thread:$0]  %s219_s10, 16, %s221_s13, [#allocation7]  }
  0xc1   :  { %421 = dma.done.wait [#allocation7], 16  }
  0xc2   :  { %422 = vsyncadd [#allocation7], 4294967280 }
  0xc3   :  { %423 = dma.done.wait [#allocation12], 32  }
  0xc4   :  { %424 = vsyncadd [#allocation12], 4294967264 }
  0xc5   :  { %258 = vsyncpa [#allocation6], 1 }
  0xc6   :  { %259 = vsyncpa [#allocation9], 1 }
  0xc7   :  { %260 = vsyncpa [#allocation7], 1 }
  0xc8   :  { %261 = vsyncpa [#allocation12], 1 }

</bundles_post_ra>
